<compile_context>
chip_gen: v7x
topology: tpu7x:2x2x1
jax: 0.10.0
libtpu: 0.0.40
codegen_flags: <defaults>
</compile_context>

<pallas_src>
import jax
import jax.numpy as jnp
from jax.experimental import pallas as pl
from jax.experimental.pallas import tpu as pltpu


_LANE = 128
_SUBLANE = 8


def _round_up(x, m):
    return ((x + m - 1) // m) * m


def _pad2(m, rows, cols):
    return jnp.pad(m, ((0, rows - m.shape[0]), (0, cols - m.shape[1])))


# --------------------------------------------------------------------------
# Setup-time folding: adjacency mixing + per-node msg/self weights -> one
# block matrix, so a GraphConv layer becomes a single GEMM.
# --------------------------------------------------------------------------
def _fold_graph_conv(A, w_msg, w_self):
    """B (N*Cin, N*Cout) with
       B[j*Cin:(j+1)*Cin, n*Cout:(n+1)*Cout] = A[n, j]*Wmsg[j].T + (n==j)*Wself[n].T
    so that X_flat @ B == flatten(A @ vwl(X, Wmsg) + vwl(X, Wself)),
    where X_flat[:, j*Cin:(j+1)*Cin] = X[:, j, :] (node-major flatten)."""
    n, c_out, c_in = w_msg.shape
    wm_t = jnp.transpose(w_msg, (0, 2, 1))   # (j, Cin, Cout) == Wmsg[j].T
    ws_t = jnp.transpose(w_self, (0, 2, 1))  # (n, Cin, Cout) == Wself[n].T
    blocks = A.T[:, :, None, None] * wm_t[:, None, :, :]            # (j, n, Cin, Cout)
    blocks = blocks + jnp.eye(n, dtype=A.dtype)[:, :, None, None] * ws_t[:, None, :, :]
    return blocks.transpose(0, 2, 1, 3).reshape(n * c_in, n * c_out)


# --------------------------------------------------------------------------
# Fused kernel: [GEMM + bias + ReLU] per conv layer, then Linear -> ReLU ->
# Linear head. Activations stay in vregs/VMEM (f32); dot inputs are cast to
# the weight dtype (bf16 or f32); one unmasked lane-dense store at the end.
# --------------------------------------------------------------------------
def _make_fused_kernel(n_conv):
    def kernel(*refs):
        # refs = x, [B_i, bias_i] * n_conv, w1, c1, w2, c2, out
        out_ref = refs[-1]
        h = refs[0][...].astype(jnp.float32)
        idx = 1
        for _ in range(n_conv):
            B = refs[idx][...]
            b = refs[idx + 1][...]
            idx += 2
            h = jnp.dot(h.astype(B.dtype), B, preferred_element_type=jnp.float32) + b
            h = jnp.maximum(h, 0.0)                      # fused ReLU (f32 VPU)
        w1 = refs[idx][...]
        c1 = refs[idx + 1][...]
        w2 = refs[idx + 2][...]
        c2 = refs[idx + 3][...]
        z = jnp.dot(h.astype(w1.dtype), w1, preferred_element_type=jnp.float32) + c1
        z = jnp.maximum(z, 0.0)
        y = jnp.dot(z.astype(w2.dtype), w2, preferred_element_type=jnp.float32) + c2
        out_ref[...] = y.astype(out_ref.dtype)
    return kernel


# --------------------------------------------------------------------------
# Factory: fold + pad + cast all weights ONCE, return a jitted fn of x only.
# --------------------------------------------------------------------------
def make_gcn_stacking_forward(A, conv_params, head_params, n_nodes, c0,
                              compute_dtype=jnp.bfloat16, block_bs=None):
    in_w = n_nodes * c0
    in_pad = _round_up(in_w, _LANE)

    weight_ops = []
    cur_w = in_pad
    for (w_msg, w_self, bias) in conv_params:
        n, c_out, _ = w_msg.shape
        B = _fold_graph_conv(A, w_msg, w_self)           # (N*Cin, N*Cout)
        out_w = n * c_out
        out_pad_l = _round_up(out_w, _LANE)
        weight_ops.append(_pad2(B, cur_w, out_pad_l).astype(compute_dtype))
        weight_ops.append(_pad2(bias.reshape(1, out_w), 1, out_pad_l).astype(jnp.float32))
        cur_w = out_pad_l

    w1, b1, w2, b2 = head_params     # torch layout: (hid, n_feat), (1, hid), (ncls, hid), (1, ncls)
    hid = w1.shape[0]
    n_out = w2.shape[0]
    hid_pad = _round_up(hid, _LANE)
    out_pad = _round_up(n_out, _LANE)
    weight_ops.append(_pad2(w1.T, cur_w, hid_pad).astype(compute_dtype))
    weight_ops.append(_pad2(b1.reshape(1, hid), 1, hid_pad).astype(jnp.float32))
    weight_ops.append(_pad2(w2.T, hid_pad, out_pad).astype(compute_dtype))
    weight_ops.append(_pad2(b2.reshape(1, n_out), 1, out_pad).astype(jnp.float32))
    weight_ops = [jax.device_put(w) for w in weight_ops]

    kernel = _make_fused_kernel(len(conv_params))

    @jax.jit
    def fwd(x):
        bs = x.shape[0]
        if block_bs is not None:
            blk = block_bs
        elif bs >= 256:
            blk = 256
        elif bs >= 128:
            blk = 128
        else:
            blk = _round_up(bs, _SUBLANE)
        bs_pad = _round_up(bs, blk)

        # Node-major flatten (identical to torch.reshape(H, (bs, -1))), then pad
        # rows to the batch block and lanes to a multiple of 128 (zeros are exact
        # because the padded rows of the first folded B are zero).
        x_flat = _pad2(x.reshape(bs, in_w), bs_pad, in_pad)

        in_specs = [pl.BlockSpec((blk, in_pad), lambda i: (i, 0))]
        for w in weight_ops:
            # Constant index_map -> weights stay VMEM-resident across grid steps.
            in_specs.append(pl.BlockSpec(w.shape, lambda i: (0, 0)))

        out = pl.pallas_call(
            kernel,
            out_shape=jax.ShapeDtypeStruct((bs_pad, out_pad), x.dtype),
            grid=(bs_pad // blk,),
            in_specs=in_specs,
            out_specs=pl.BlockSpec((blk, out_pad), lambda i: (i, 0)),
            compiler_params=pltpu.CompilerParams(
                dimension_semantics=("parallel",)),   # shards across v7x's 2 TCs
        )(x_flat, *weight_ops)
        return out[:bs, :n_out]

    return fwd


# --------------------------------------------------------------------------
# Parameter init (matches the PyTorch init distributions:
# kaiming_uniform with a=sqrt(5) -> U(-1/sqrt(fan_in), 1/sqrt(fan_in)),
# GraphConv bias -> U(-1/sqrt(out_ch), 1/sqrt(out_ch)).)
# --------------------------------------------------------------------------
def init_params(key, n_classes, n_channels_list, head_hidden):
    conv_params = []
    for i in range(len(n_channels_list) - 1):
        in_ch, out_ch = n_channels_list[i], n_channels_list[i + 1]
        key, k1, k2, k3 = jax.random.split(key, 4)
        bw = 1.0 / jnp.sqrt(in_ch)
        bb = 1.0 / jnp.sqrt(out_ch)
        w_msg = jax.random.uniform(k1, (n_classes, out_ch, in_ch), jnp.float32, -bw, bw)
        w_self = jax.random.uniform(k2, (n_classes, out_ch, in_ch), jnp.float32, -bw, bw)
        bias = jax.random.uniform(k3, (n_classes, out_ch), jnp.float32, -bb, bb)
        conv_params.append((w_msg, w_self, bias))

    n_feat = n_classes * n_channels_list[-1]
    key, k1, k2, k3, k4 = jax.random.split(key, 5)
    b1b = 1.0 / jnp.sqrt(n_feat)
    b2b = 1.0 / jnp.sqrt(head_hidden)
    w1 = jax.random.uniform(k1, (head_hidden, n_feat), jnp.float32, -b1b, b1b)
    b1 = jax.random.uniform(k2, (1, head_hidden), jnp.float32, -b1b, b1b)
    w2 = jax.random.uniform(k3, (n_classes, head_hidden), jnp.float32, -b2b, b2b)
    b2 = jax.random.uniform(k4, (1, n_classes), jnp.float32, -b2b, b2b)
    return conv_params, (w1, b1, w2, b2)


# --------------------------------------------------------------------------
# Pure-JAX reference (mirrors the PyTorch forward).
# --------------------------------------------------------------------------
def reference_forward(x, A, conv_params, head_params):
    h = x
    for (w_msg, w_self, bias) in conv_params:
        m = jnp.einsum("bni,noi->bno", h, w_msg)
        m = jnp.einsum("nj,bjo->bno", A, m)
        s = jnp.einsum("bni,noi->bno", h, w_self)
        h = jax.nn.relu(m + s + bias[None])
    h = h.reshape(h.shape[0], -1)
    w1, b1, w2, b2 = head_params
    z = jax.nn.relu(h @ w1.T + b1)
    return z @ w2.T + b2


if __name__ == "__main__":
    # Small shapes consistent with the module: X: (batch, n_classes, n_channels_list[0])
    bs = 8
    n_classes = 4
    n_channels_list = [5, 32, 16]
    head_hidden = 8  # head n_features_list = [n_classes * 16, 8, n_classes], use_tail_as_out

    key = jax.random.PRNGKey(0)
    key, kx, kp = jax.random.split(key, 3)
    x = jax.random.normal(kx, (bs, n_classes, n_channels_list[0]), jnp.float32)

    # add_self_loop=False branch of the module
    A = (1.0 - jnp.eye(n_classes, dtype=jnp.float32)) / (n_classes - 1)

    conv_params, head_params = init_params(kp, n_classes, n_channels_list, head_hidden)

    ref = jax.block_until_ready(reference_forward(x, A, conv_params, head_params))

    # f32 path: bit-for-bit-ish with the reference (only reassociation differences).
    fwd_f32 = make_gcn_stacking_forward(
        A, conv_params, head_params, n_classes, n_channels_list[0],
        compute_dtype=jnp.float32)
    out_f32 = jax.block_until_ready(fwd_f32(x))

    # bf16 matmul-operand path (f32 accumulation & elementwise): halves weight DMA
    # on v6e/v7x and uses the bf16 MXU mode. Looser tolerance from bf16 rounding.
    fwd_bf16 = make_gcn_stacking_forward(
        A, conv_params, head_params, n_classes, n_channels_list[0],
        compute_dtype=jnp.bfloat16)
    out_bf16 = jax.block_until_ready(fwd_bf16(x))

    assert out_f32.shape == (bs, n_classes), out_f32.shape
    assert out_bf16.shape == (bs, n_classes), out_bf16.shape
    assert jnp.allclose(out_f32, ref, rtol=1e-3, atol=1e-3), (
        f"f32 max abs err = {jnp.max(jnp.abs(out_f32 - ref))}"
    )
    assert jnp.allclose(out_bf16, ref, rtol=3e-2, atol=3e-2), (
        f"bf16 max abs err = {jnp.max(jnp.abs(out_bf16 - ref))}"
    )
    print("KERNEL_OK")
</pallas_src>

<mosaic_0001>
module attributes {stable_mosaic.version = 11 : i64} {
  func.func @kernel(%arg0: i32, %arg1: memref<8x128xf32, #tpu.memory_space<vmem>>, %arg2: memref<128x128xf32, #tpu.memory_space<vmem>>, %arg3: memref<1x128xf32, #tpu.memory_space<vmem>>, %arg4: memref<128x128xf32, #tpu.memory_space<vmem>>, %arg5: memref<1x128xf32, #tpu.memory_space<vmem>>, %arg6: memref<128x128xf32, #tpu.memory_space<vmem>>, %arg7: memref<1x128xf32, #tpu.memory_space<vmem>>, %arg8: memref<128x128xf32, #tpu.memory_space<vmem>>, %arg9: memref<1x128xf32, #tpu.memory_space<vmem>>, %arg10: memref<8x128xf32, #tpu.memory_space<vmem>>) attributes {dimension_semantics = [#tpu.dimension_semantics<parallel>], iteration_bounds = array<i64: 1>, scalar_prefetch = 0 : i64, scratch_operands = 0 : i64, tpu.core_type = #tpu.core_type<tc>, window_params = [{transform_indices = @transform_0, window_bounds = array<i64: 8, 128>}, {pipeline_mode = #tpu.pipeline_mode<synchronous>, transform_indices = @transform_1, window_bounds = array<i64: 128, 128>}, {pipeline_mode = #tpu.pipeline_mode<synchronous>, transform_indices = @transform_2, window_bounds = array<i64: 1, 128>}, {pipeline_mode = #tpu.pipeline_mode<synchronous>, transform_indices = @transform_3, window_bounds = array<i64: 128, 128>}, {pipeline_mode = #tpu.pipeline_mode<synchronous>, transform_indices = @transform_4, window_bounds = array<i64: 1, 128>}, {pipeline_mode = #tpu.pipeline_mode<synchronous>, transform_indices = @transform_5, window_bounds = array<i64: 128, 128>}, {pipeline_mode = #tpu.pipeline_mode<synchronous>, transform_indices = @transform_6, window_bounds = array<i64: 1, 128>}, {pipeline_mode = #tpu.pipeline_mode<synchronous>, transform_indices = @transform_7, window_bounds = array<i64: 128, 128>}, {pipeline_mode = #tpu.pipeline_mode<synchronous>, transform_indices = @transform_8, window_bounds = array<i64: 1, 128>}, {transform_indices = @transform_9, window_bounds = array<i64: 8, 128>}]} {
    %c0 = arith.constant 0 : index
    %c0_0 = arith.constant 0 : index
    %0 = vector.load %arg1[%c0, %c0_0] : memref<8x128xf32, #tpu.memory_space<vmem>>, vector<8x128xf32>
    %c0_1 = arith.constant 0 : index
    %c0_2 = arith.constant 0 : index
    %1 = vector.load %arg2[%c0_1, %c0_2] : memref<128x128xf32, #tpu.memory_space<vmem>>, vector<128x128xf32>
    %c0_3 = arith.constant 0 : index
    %c0_4 = arith.constant 0 : index
    %2 = vector.load %arg3[%c0_3, %c0_4] : memref<1x128xf32, #tpu.memory_space<vmem>>, vector<1x128xf32>
    %cst = arith.constant dense<0.000000e+00> : vector<8x128xf32>
    %3 = tpu.matmul %0, %1, %cst {dimension_numbers = #tpu.dot_dimension_numbers<[1], [0], [0], [1], [0, 0, 1, 1], [], []>} : vector<8x128xf32>, vector<128x128xf32>, vector<8x128xf32> -> vector<8x128xf32>
    %4 = vector.broadcast %2 : vector<1x128xf32> to vector<8x128xf32>
    %5 = arith.addf %3, %4 : vector<8x128xf32>
    %cst_5 = arith.constant 0.000000e+00 : f32
    %6 = vector.broadcast %cst_5 : f32 to vector<8x128xf32>
    %7 = arith.maximumf %5, %6 : vector<8x128xf32>
    %c0_6 = arith.constant 0 : index
    %c0_7 = arith.constant 0 : index
    %8 = vector.load %arg4[%c0_6, %c0_7] : memref<128x128xf32, #tpu.memory_space<vmem>>, vector<128x128xf32>
    %c0_8 = arith.constant 0 : index
    %c0_9 = arith.constant 0 : index
    %9 = vector.load %arg5[%c0_8, %c0_9] : memref<1x128xf32, #tpu.memory_space<vmem>>, vector<1x128xf32>
    %cst_10 = arith.constant dense<0.000000e+00> : vector<8x128xf32>
    %10 = tpu.matmul %7, %8, %cst_10 {dimension_numbers = #tpu.dot_dimension_numbers<[1], [0], [0], [1], [0, 0, 1, 1], [], []>} : vector<8x128xf32>, vector<128x128xf32>, vector<8x128xf32> -> vector<8x128xf32>
    %11 = vector.broadcast %9 : vector<1x128xf32> to vector<8x128xf32>
    %12 = arith.addf %10, %11 : vector<8x128xf32>
    %cst_11 = arith.constant 0.000000e+00 : f32
    %13 = vector.broadcast %cst_11 : f32 to vector<8x128xf32>
    %14 = arith.maximumf %12, %13 : vector<8x128xf32>
    %c0_12 = arith.constant 0 : index
    %c0_13 = arith.constant 0 : index
    %15 = vector.load %arg6[%c0_12, %c0_13] : memref<128x128xf32, #tpu.memory_space<vmem>>, vector<128x128xf32>
    %c0_14 = arith.constant 0 : index
    %c0_15 = arith.constant 0 : index
    %16 = vector.load %arg7[%c0_14, %c0_15] : memref<1x128xf32, #tpu.memory_space<vmem>>, vector<1x128xf32>
    %c0_16 = arith.constant 0 : index
    %c0_17 = arith.constant 0 : index
    %17 = vector.load %arg8[%c0_16, %c0_17] : memref<128x128xf32, #tpu.memory_space<vmem>>, vector<128x128xf32>
    %c0_18 = arith.constant 0 : index
    %c0_19 = arith.constant 0 : index
    %18 = vector.load %arg9[%c0_18, %c0_19] : memref<1x128xf32, #tpu.memory_space<vmem>>, vector<1x128xf32>
    %cst_20 = arith.constant dense<0.000000e+00> : vector<8x128xf32>
    %19 = tpu.matmul %14, %15, %cst_20 {dimension_numbers = #tpu.dot_dimension_numbers<[1], [0], [0], [1], [0, 0, 1, 1], [], []>} : vector<8x128xf32>, vector<128x128xf32>, vector<8x128xf32> -> vector<8x128xf32>
    %20 = vector.broadcast %16 : vector<1x128xf32> to vector<8x128xf32>
    %21 = arith.addf %19, %20 : vector<8x128xf32>
    %cst_21 = arith.constant 0.000000e+00 : f32
    %22 = vector.broadcast %cst_21 : f32 to vector<8x128xf32>
    %23 = arith.maximumf %21, %22 : vector<8x128xf32>
    %cst_22 = arith.constant dense<0.000000e+00> : vector<8x128xf32>
    %24 = tpu.matmul %23, %17, %cst_22 {dimension_numbers = #tpu.dot_dimension_numbers<[1], [0], [0], [1], [0, 0, 1, 1], [], []>} : vector<8x128xf32>, vector<128x128xf32>, vector<8x128xf32> -> vector<8x128xf32>
    %25 = vector.broadcast %18 : vector<1x128xf32> to vector<8x128xf32>
    %26 = arith.addf %24, %25 : vector<8x128xf32>
    %c0_23 = arith.constant 0 : index
    %c0_24 = arith.constant 0 : index
    %27 = vector.load %arg10[%c0_23, %c0_24] : memref<8x128xf32, #tpu.memory_space<vmem>>, vector<8x128xf32>
    tpu.vector_store %arg10[%c0_23, %c0_24], %26 {strides = array<i32>} : memref<8x128xf32, #tpu.memory_space<vmem>>, vector<8x128xf32>,
    return
  }
  func.func @transform_0(%arg0: i32) -> (i32, i32) {
    %c0_i32 = arith.constant 0 : i32
    %c0_i32_0 = arith.constant 0 : i32
    return %arg0, %c0_i32 : i32, i32
  }
  func.func @transform_1(%arg0: i32) -> (i32, i32) {
    %c0_i32 = arith.constant 0 : i32
    %c0_i32_0 = arith.constant 0 : i32
    %c0_i32_1 = arith.constant 0 : i32
    return %c0_i32, %c0_i32_0 : i32, i32
  }
  func.func @transform_2(%arg0: i32) -> (i32, i32) {
    %c0_i32 = arith.constant 0 : i32
    %c0_i32_0 = arith.constant 0 : i32
    %c0_i32_1 = arith.constant 0 : i32
    return %c0_i32, %c0_i32_0 : i32, i32
  }
  func.func @transform_3(%arg0: i32) -> (i32, i32) {
    %c0_i32 = arith.constant 0 : i32
    %c0_i32_0 = arith.constant 0 : i32
    %c0_i32_1 = arith.constant 0 : i32
    return %c0_i32, %c0_i32_0 : i32, i32
  }
  func.func @transform_4(%arg0: i32) -> (i32, i32) {
    %c0_i32 = arith.constant 0 : i32
    %c0_i32_0 = arith.constant 0 : i32
    %c0_i32_1 = arith.constant 0 : i32
    return %c0_i32, %c0_i32_0 : i32, i32
  }
  func.func @transform_5(%arg0: i32) -> (i32, i32) {
    %c0_i32 = arith.constant 0 : i32
    %c0_i32_0 = arith.constant 0 : i32
    %c0_i32_1 = arith.constant 0 : i32
    return %c0_i32, %c0_i32_0 : i32, i32
  }
  func.func @transform_6(%arg0: i32) -> (i32, i32) {
    %c0_i32 = arith.constant 0 : i32
    %c0_i32_0 = arith.constant 0 : i32
    %c0_i32_1 = arith.constant 0 : i32
    return %c0_i32, %c0_i32_0 : i32, i32
  }
  func.func @transform_7(%arg0: i32) -> (i32, i32) {
    %c0_i32 = arith.constant 0 : i32
    %c0_i32_0 = arith.constant 0 : i32
    %c0_i32_1 = arith.constant 0 : i32
    return %c0_i32, %c0_i32_0 : i32, i32
  }
  func.func @transform_8(%arg0: i32) -> (i32, i32) {
    %c0_i32 = arith.constant 0 : i32
    %c0_i32_0 = arith.constant 0 : i32
    %c0_i32_1 = arith.constant 0 : i32
    return %c0_i32, %c0_i32_0 : i32, i32
  }
  func.func @transform_9(%arg0: i32) -> (i32, i32) {
    %c0_i32 = arith.constant 0 : i32
    %c0_i32_0 = arith.constant 0 : i32
    return %arg0, %c0_i32 : i32, i32
  }
}

</mosaic_0001>

<bundles_post_ra>
// kernel: fwd.1
= control target key start
LH: loop header
LB: loop body
LE: loop exit
PB: predicated region body
PF: predicated region fallthrough
CT: control target
= control target key end

     0   :  { %14 = vsyncpa [#allocation3], 0  ;;  %s1058_s0 = inlined_call_operand.vmem [shape: f32[8,128], index: 0, kind: input, shape index: {}]   ;;  %s1059_s1 = inlined_call_operand.hbm [shape: f32[128,128], index: 1, kind: input, shape index: {}]   ;;  %s1060_s2 = inlined_call_operand.vmem [shape: f32[1,128], index: 2, kind: input, shape index: {}]   ;;  %s1061_s3 = inlined_call_operand.hbm [shape: f32[128,128], index: 3, kind: input, shape index: {}]   ;;  %s1062_s4 = inlined_call_operand.vmem [shape: f32[1,128], index: 4, kind: input, shape index: {}]   ;;  %s1063_s5 = inlined_call_operand.hbm [shape: f32[128,128], index: 5, kind: input, shape index: {}]   ;;  %s1064_s6 = inlined_call_operand.vmem [shape: f32[1,128], index: 6, kind: input, shape index: {}]   ;;  %s1065_s7 = inlined_call_operand.vmem [shape: f32[128,128], index: 7, kind: input, shape index: {}]   ;;  %s1066_s8 = inlined_call_operand.vmem [shape: f32[1,128], index: 8, kind: input, shape index: {}]   ;;  %s1067_s9 = inlined_call_operand.vmem [shape: f32[8,128], index: 9, kind: output, shape index: {}]  }
   0x1   :  { %15 = vsyncpa [#allocation5], 0  ;;  %s842_s30 = smov [#allocation4]   ;;  %s843_s11 = smov [#allocation2]  }
   0x2   :  { %s37_s10 = sshll.u32 %s842_s30, 4  ;;  %s23_s12 = sshll.u32 %s843_s11, 4  ;;  %s38_s10 = int_to_ptr.vmem [resolvable:$true] %s37_s10  ;;  %s900_s12 = int_to_ptr.vmem [resolvable:$true] %s23_s12 }
   0x3   :  { %s772_s15 = scalar_lea.hbm %s1061_s3, 2048 }
   0x4   :  { %p773_p0 = scmp.ne.s32.totalorder %s1061_s3, %s772_s15  ;;  %p776_p1 = scmp.lt.u32.totalorder %s772_s15, %s1061_s3 }
   0x6   :  { %p778_p2 = pnand %p776_p1, %p773_p0 }
   0x8   :  { %781 = shalt.err (!%p778_p2)
}
   0x9   :  { %s782_s20 = scalar_lea.vmem %s38_s10, 2048  ;;  %p787_p4 = scmp.lt.s32.totalorder %s38_s10, %s38_s10 }
   0xa   :  { %p783_p3 = scmp.ne.s32.totalorder %s38_s10, %s782_s20  ;;  %p788_p5 = scmp.lt.s32.totalorder %s782_s20, %s782_s20 }
   0xc   :  { %p789_p6 = por %p788_p5, %p787_p4 }
   0xe   :  { %p790_p7 = pnand %p789_p6, %p783_p3 }
  0x10   :  { %793 = shalt.err (!%p790_p7)
}
  0x11   :  { %s844_s21 = smov 128   ;;  %s845_s22 = smov 8  }
  0x12   :  { %43 = dma.hbm_to_vmem [thread:$0]  %s1061_s3, 2048, %s38_s10, [#allocation5], %s844_s21, %s844_s21, %s845_s22  }
  0x13   :  { %s794_s27 = scalar_lea.hbm %s1059_s1, 2048 }
  0x14   :  { %p795_p8 = scmp.ne.s32.totalorder %s1059_s1, %s794_s27  ;;  %p798_p9 = scmp.lt.u32.totalorder %s794_s27, %s1059_s1 }
  0x16   :  { %p800_p10 = pnand %p798_p9, %p795_p8 }
  0x18   :  { %803 = shalt.err (!%p800_p10)
}
  0x19   :  { %s804_s13 = scalar_lea.vmem %s900_s12, 2048  ;;  %p809_p12 = scmp.lt.s32.totalorder %s900_s12, %s900_s12 }
  0x1a   :  { %p805_p11 = scmp.ne.s32.totalorder %s900_s12, %s804_s13  ;;  %p810_p13 = scmp.lt.s32.totalorder %s804_s13, %s804_s13 }
  0x1c   :  { %p811_p0 = por %p810_p13, %p809_p12 }
  0x1e   :  { %p812_p1 = pnand %p811_p0, %p805_p11 }
  0x20   :  { %815 = shalt.err (!%p812_p1)
}
  0x21   :  { %29 = dma.hbm_to_vmem [thread:$0]  %s1059_s1, 2048, %s900_s12, [#allocation3], %s844_s21, %s844_s21, %s845_s22  }
  0x22   :  { %s846_s14 = smov [#allocation6]   ;;  %s816_s18 = scalar_lea.hbm %s1063_s5, 2048 }
  0x23   :  { %s51_s15 = sshll.u32 %s846_s14, 4  ;;  %p817_p2 = scmp.ne.s32.totalorder %s1063_s5, %s816_s18  ;;  %s52_s15 = int_to_ptr.vmem [resolvable:$true] %s51_s15 }
  0x24   :  { %p820_p3 = scmp.lt.u32.totalorder %s816_s18, %s1063_s5 }
  0x26   :  { %p822_p4 = pnand %p820_p3, %p817_p2 }
  0x28   :  { %825 = shalt.err (!%p822_p4)
}
  0x29   :  { %s826_s25 = scalar_lea.vmem %s52_s15, 2048  ;;  %p831_p6 = scmp.lt.s32.totalorder %s52_s15, %s52_s15 }
  0x2a   :  { %p827_p5 = scmp.ne.s32.totalorder %s52_s15, %s826_s25  ;;  %p832_p7 = scmp.lt.s32.totalorder %s826_s25, %s826_s25 }
  0x2c   :  { %p833_p8 = por %p832_p7, %p831_p6 }
  0x2e   :  { %p834_p9 = pnand %p833_p8, %p827_p5 }
  0x30   :  { %837 = shalt.err (!%p834_p9)
}
  0x31   :  { %57 = dma.hbm_to_vmem [thread:$0]  %s1063_s5, 2048, %s52_s15, [#allocation5], %s844_s21, %s844_s21, %s845_s22  }
  0x32   :  { %838 = dma.done.wait [#allocation3], 2048  }
  0x33   :  { %839 = vsyncadd [#allocation3], 4294965248 }
  0x34   :  { %840 = dma.done.wait [#allocation5], 4096  }
  0x35   :  { %841 = vsyncadd [#allocation5], 4294963200  ;;  %v847_v0 = vmov 0.0|0.0   ;;  %vm848_vm0 = vmmov 0   ;;  %v849_v1 = vmov 0.0   ;;  %v74_v2 = vld [vmem:[#allocation2] sm:$0xff] }
  0x36   :  { %668 = vmatprep.subr.bf16.mxu0 %v847_v0  ;;  %560 = vmatprep.mubr.msk.f32.mxu0 %vm848_vm0, %v849_v1  ;;  %v75_v3 = vld [vmem:[#allocation2 + $0x8] sm:$0xff]  ;;  %v76_v4 = vld [vmem:[#allocation2 + $0x10] sm:$0xff]  ;;  %v77_v6 = vld [vmem:[#allocation2 + $0x18] sm:$0xff] }
  0x37   :  { %692 = vmatprep.subr.bf16.mxu1 %v847_v0  ;;  %595 = vmatprep.mubr.msk.f32.mxu1 %vm848_vm0, %v849_v1  ;;  %v669_v5 = vpack.c.bf16 %v75_v3, %v74_v2  ;;  %v672_v7 = vpack.c.bf16 %v77_v6, %v76_v4  ;;  %v78_v8 = vld [vmem:[#allocation2 + $0x20] sm:$0xff]  ;;  %v79_v9 = vld [vmem:[#allocation2 + $0x28] sm:$0xff]  ;;  %v170_v12 = vld [vmem:[#allocation4 + $0x10] sm:$0xff] }
  0x38   :  { %v168_v10 = vld [vmem:[#allocation4] sm:$0xff]  ;;  %v169_v11 = vld [vmem:[#allocation4 + $0x8] sm:$0xff]  ;;  %v171_v13 = vld [vmem:[#allocation4 + $0x18] sm:$0xff]  ;;  %v675_v14 = vpack.c.bf16 %v79_v9, %v78_v8 }
  0x39   :  { %670 = vmatpush3.bf16.msra.mxu0 %v669_v5  ;;  %v693_v15 = vpack.c.bf16 %v169_v11, %v168_v10  ;;  %v80_v16 = vld [vmem:[#allocation2 + $0x30] sm:$0xff]  ;;  %v81_v17 = vld [vmem:[#allocation2 + $0x38] sm:$0xff]  ;;  %v696_v18 = vpack.c.bf16 %v171_v13, %v170_v12  ;;  %v172_v19 = vld [vmem:[#allocation4 + $0x20] sm:$0xff] }
  0x3a   :  { %671 = vmatprep.subr.bf16.mxu0 %v847_v0  ;;  %v173_v20 = vld [vmem:[#allocation4 + $0x28] sm:$0xff]  ;;  %v678_v21 = vpack.c.bf16 %v81_v17, %v80_v16  ;;  %v82_v22 = vld [vmem:[#allocation2 + $0x40] sm:$0xff]  ;;  %v174_v25 = vld [vmem:[#allocation4 + $0x30] sm:$0xff] }
  0x3b   :  { %694 = vmatpush3.bf16.msra.mxu1 %v693_v15  ;;  %v83_v23 = vld [vmem:[#allocation2 + $0x48] sm:$0xff]  ;;  %v699_v24 = vpack.c.bf16 %v173_v20, %v172_v19  ;;  %v175_v26 = vld [vmem:[#allocation4 + $0x38] sm:$0xff]  ;;  %v84_v28 = vld [vmem:[#allocation2 + $0x50] sm:$0xff] }
  0x3c   :  { %695 = vmatprep.subr.bf16.mxu1 %v847_v0  ;;  %v681_v27 = vpack.c.bf16 %v83_v23, %v82_v22  ;;  %v85_v29 = vld [vmem:[#allocation2 + $0x58] sm:$0xff]  ;;  %v702_v30 = vpack.c.bf16 %v175_v26, %v174_v25  ;;  %v176_v31 = vld [vmem:[#allocation4 + $0x40] sm:$0xff]  ;;  %v177_v32 = vld [vmem:[#allocation4 + $0x48] sm:$0xff] }
  0x3d   :  { %673 = vmatpush3.bf16.msra.mxu0 %v672_v7  ;;  %v684_v33 = vpack.c.bf16 %v85_v29, %v84_v28  ;;  %v86_v34 = vld [vmem:[#allocation2 + $0x60] sm:$0xff]  ;;  %v87_v35 = vld [vmem:[#allocation2 + $0x68] sm:$0xff]  ;;  %v705_v36 = vpack.c.bf16 %v177_v32, %v176_v31  ;;  %v178_v37 = vld [vmem:[#allocation4 + $0x50] sm:$0xff] }
  0x3e   :  { %674 = vmatprep.subr.bf16.mxu0 %v847_v0  ;;  %v179_v38 = vld [vmem:[#allocation4 + $0x58] sm:$0xff]  ;;  %v687_v39 = vpack.c.bf16 %v87_v35, %v86_v34  ;;  %v88_v40 = vld [vmem:[#allocation2 + $0x70] sm:$0xff]  ;;  %v180_v43 = vld [vmem:[#allocation4 + $0x60] sm:$0xff] }
  0x3f   :  { %697 = vmatpush3.bf16.msra.mxu1 %v696_v18  ;;  %v89_v41 = vld [vmem:[#allocation2 + $0x78] sm:$0xff]  ;;  %v708_v42 = vpack.c.bf16 %v179_v38, %v178_v37  ;;  %v181_v44 = vld [vmem:[#allocation4 + $0x68] sm:$0xff]  ;;  %v73_v47 = vld [vmem:[%s1058_s0] sm:$0xff] }
  0x40   :  { %698 = vmatprep.subr.bf16.mxu1 %v847_v0  ;;  %v690_v45 = vpack.c.bf16 %v89_v41, %v88_v40  ;;  %v711_v46 = vpack.c.bf16 %v181_v44, %v180_v43  ;;  %v182_v48 = vld [vmem:[#allocation4 + $0x70] sm:$0xff]  ;;  %v183_v49 = vld [vmem:[#allocation4 + $0x78] sm:$0xff]  ;;  %v262_v51 = vld [vmem:[#allocation6] sm:$0xff] }
  0x41   :  { %676 = vmatpush3.bf16.msra.mxu0 %v675_v14  ;;  %v714_v50 = vpack.c.bf16 %v183_v49, %v182_v48  ;;  %v263_v52 = vld [vmem:[#allocation6 + $0x8] sm:$0xff]  ;;  %v264_v53 = vld [vmem:[#allocation6 + $0x10] sm:$0xff]  ;;  %v265_v55 = vld [vmem:[#allocation6 + $0x18] sm:$0xff] }
  0x42   :  { %677 = vmatprep.subr.bf16.mxu0 %v847_v0  ;;  %v717_v54 = vpack.c.bf16 %v263_v52, %v262_v51  ;;  %v720_v56 = vpack.c.bf16 %v265_v55, %v264_v53  ;;  %v266_v57 = vld [vmem:[#allocation6 + $0x20] sm:$0xff]  ;;  %v267_v58 = vld [vmem:[#allocation6 + $0x28] sm:$0xff]  ;;  %v268_v60 = vld [vmem:[#allocation6 + $0x30] sm:$0xff] }
  0x43   :  { %700 = vmatpush3.bf16.msra.mxu1 %v699_v24  ;;  %v723_v59 = vpack.c.bf16 %v267_v58, %v266_v57  ;;  %v269_v61 = vld [vmem:[#allocation6 + $0x38] sm:$0xff]  ;;  %v270_v63 = vld [vmem:[#allocation6 + $0x40] sm:$0xff]  ;;  %v271_v2 = vld [vmem:[#allocation6 + $0x48] sm:$0xff] }
  0x44   :  { %701 = vmatprep.subr.bf16.mxu1 %v847_v0  ;;  %v726_v62 = vpack.c.bf16 %v269_v61, %v268_v60  ;;  %v729_v3 = vpack.c.bf16 %v271_v2, %v270_v63  ;;  %v272_v4 = vld [vmem:[#allocation6 + $0x50] sm:$0xff]  ;;  %v273_v5 = vld [vmem:[#allocation6 + $0x58] sm:$0xff]  ;;  %v274_v7 = vld [vmem:[#allocation6 + $0x60] sm:$0xff] }
  0x45   :  { %679 = vmatpush3.bf16.msra.mxu0 %v678_v21  ;;  %v732_v6 = vpack.c.bf16 %v273_v5, %v272_v4  ;;  %v275_v8 = vld [vmem:[#allocation6 + $0x68] sm:$0xff]  ;;  %v456_v10 = vld [vmem:[%s1060_s2] ss:$0 sm:$0xff]  ;;  %v276_v15 = vld [vmem:[#allocation6 + $0x70] sm:$0xff] }
  0x46   :  { %680 = vmatprep.subr.bf16.mxu0 %v847_v0  ;;  %v735_v9 = vpack.c.bf16 %v275_v8, %v274_v7  ;;  %v277_v16 = vld [vmem:[#allocation6 + $0x78] sm:$0xff]  ;;  %v279_v18 = vld [vmem:[%s1065_s7] sm:$0xff]  ;;  %v280_v19 = vld [vmem:[%s1065_s7 + $0x8] sm:$0xff] }
  0x47   :  { %703 = vmatpush3.bf16.msra.mxu1 %v702_v30  ;;  %v738_v17 = vpack.c.bf16 %v277_v16, %v276_v15  ;;  %v281_v20 = vld [vmem:[%s1065_s7 + $0x10] sm:$0xff]  ;;  %v741_v21 = vpack.c.bf16 %v280_v19, %v279_v18  ;;  %v283_v23 = vld [vmem:[%s1065_s7 + $0x20] sm:$0xff]  ;;  %v284_v24 = vld [vmem:[%s1065_s7 + $0x28] sm:$0xff] }
  0x48   :  { %704 = vmatprep.subr.bf16.mxu1 %v847_v0  ;;  %v747_v25 = vpack.c.bf16 %v284_v24, %v283_v23  ;;  %v285_v26 = vld [vmem:[%s1065_s7 + $0x30] sm:$0xff]  ;;  %v287_v29 = vld [vmem:[%s1065_s7 + $0x40] sm:$0xff]  ;;  %v288_v30 = vld [vmem:[%s1065_s7 + $0x48] sm:$0xff] }
  0x49   :  { %682 = vmatpush3.bf16.msra.mxu0 %v681_v27  ;;  %v286_v27 = vld [vmem:[%s1065_s7 + $0x38] sm:$0xff]  ;;  %v753_v31 = vpack.c.bf16 %v288_v30, %v287_v29  ;;  %v289_v32 = vld [vmem:[%s1065_s7 + $0x50] sm:$0xff]  ;;  %v291_v35 = vld [vmem:[%s1065_s7 + $0x60] sm:$0xff] }
  0x4a   :  { %683 = vmatprep.subr.bf16.mxu0 %v847_v0  ;;  %v750_v28 = vpack.c.bf16 %v286_v27, %v285_v26  ;;  %v457_v38 = vld [vmem:[%s1062_s4] ss:$0 sm:$0xff]  ;;  %v293_v43 = vld [vmem:[%s1065_s7 + $0x70] sm:$0xff]  ;;  %v294_v44 = vld [vmem:[%s1065_s7 + $0x78] sm:$0xff] }
  0x4b   :  { %706 = vmatpush3.bf16.msra.mxu1 %v705_v36  ;;  %v292_v36 = vld [vmem:[%s1065_s7 + $0x68] sm:$0xff] }
  0x4c   :  { %707 = vmatprep.subr.bf16.mxu1 %v847_v0  ;;  %v759_v37 = vpack.c.bf16 %v292_v36, %v291_v35 }
  0x4d   :  { %685 = vmatpush3.bf16.msra.mxu0 %v684_v33  ;;  %v290_v33 = vld [vmem:[%s1065_s7 + $0x58] sm:$0xff] }
  0x4e   :  { %686 = vmatprep.subr.bf16.mxu0 %v847_v0  ;;  %v756_v34 = vpack.c.bf16 %v290_v33, %v289_v32 }
  0x4f   :  { %709 = vmatpush3.bf16.msra.mxu1 %v708_v42 }
  0x50   :  { %710 = vmatprep.subr.bf16.mxu1 %v847_v0 }
  0x51   :  { %688 = vmatpush3.bf16.msra.mxu0 %v687_v39 }
  0x52   :  { %689 = vmatprep.subr.bf16.mxu0 %v847_v0 }
  0x53   :  { %712 = vmatpush3.bf16.msra.mxu1 %v711_v46 }
  0x54   :  { %713 = vmatprep.subr.bf16.mxu1 %v847_v0 }
  0x55   :  { %691 = vmatpush3.bf16.msra.mxu0 %v690_v45  ;;  %v762_v45 = vpack.c.bf16 %v294_v44, %v293_v43 }
  0x56   :  { %716 = vmatprep.subr.bf16.mxu0 %v847_v0 }
  0x57   :  { %715 = vmatpush3.bf16.msra.mxu1 %v714_v50  ;;  %v459_v50 = vld [vmem:[%s1066_s8] ss:$0 sm:$0xff] }
  0x58   :  { %561 = vmatmul.mubr.f32.vlgmr.msra.gmra.mrb[0].mxu0 %v73_v47  ;;  %740 = vmatprep.subr.bf16.mxu1 %v847_v0 }
  0x59   :  { %630 = vmatprep.mubr.msk.f32.mxu0 %vm848_vm0, %v849_v1  ;;  %718 = vmatpush3.bf16.msra.mxu0 %v717_v54 }
  0x5a   :  { %719 = vmatprep.subr.bf16.mxu0 %v847_v0 }
  0x5d   :  { %721 = vmatpush3.bf16.msra.mxu0 %v720_v56 }
  0x5e   :  { %722 = vmatprep.subr.bf16.mxu0 %v847_v0 }
  0x61   :  { %724 = vmatpush3.bf16.msra.mxu0 %v723_v59 }
  0x62   :  { %725 = vmatprep.subr.bf16.mxu0 %v847_v0 }
  0x65   :  { %727 = vmatpush3.bf16.msra.mxu0 %v726_v62 }
  0x66   :  { %728 = vmatprep.subr.bf16.mxu0 %v847_v0 }
  0x69   :  { %730 = vmatpush3.bf16.msra.mxu0 %v729_v3 }
  0x6a   :  { %731 = vmatprep.subr.bf16.mxu0 %v847_v0 }
  0x6d   :  { %733 = vmatpush3.bf16.msra.mxu0 %v732_v6 }
  0x6e   :  { %734 = vmatprep.subr.bf16.mxu0 %v847_v0 }
  0x71   :  { %736 = vmatpush3.bf16.msra.mxu0 %v735_v9 }
  0x72   :  { %737 = vmatprep.subr.bf16.mxu0 %v847_v0 }
  0x75   :  { %739 = vmatpush3.bf16.msra.mxu0 %v738_v17 }
 0x12b   :  { %v163_v11 = vpop.f32.mrb[0].mxu0 }
 0x12c   :  { %v164_v12 = vadd.f32 %v456_v10, %v163_v11  ;;  %v562_v13 = vpop.f32.mrb[1].mxu0 }
 0x12e   :  { %v167_v14 = vmax.f32 %v164_v12, 0.0 }
 0x130   :  { %596 = vmatmul.mubr.f32.vlgmr.msra.gmra.mrb[0].mxu1 %v167_v14 }
 0x131   :  { %665 = vmatprep.mubr.msk.f32.mxu1 %vm848_vm0, %v849_v1  ;;  %v282_v1 = vld [vmem:[%s1065_s7 + $0x18] sm:$0xff]  ;;  %742 = vmatpush3.bf16.msra.mxu1 %v741_v21 }
 0x132   :  { %v744_v22 = vpack.c.bf16 %v282_v1, %v281_v20  ;;  %743 = vmatprep.subr.bf16.mxu1 %v847_v0 }
 0x135   :  { %745 = vmatpush3.bf16.msra.mxu1 %v744_v22 }
 0x136   :  { %746 = vmatprep.subr.bf16.mxu1 %v847_v0 }
 0x139   :  { %748 = vmatpush3.bf16.msra.mxu1 %v747_v25 }
 0x13a   :  { %749 = vmatprep.subr.bf16.mxu1 %v847_v0 }
 0x13d   :  { %751 = vmatpush3.bf16.msra.mxu1 %v750_v28 }
 0x13e   :  { %752 = vmatprep.subr.bf16.mxu1 %v847_v0 }
 0x141   :  { %754 = vmatpush3.bf16.msra.mxu1 %v753_v31 }
 0x142   :  { %755 = vmatprep.subr.bf16.mxu1 %v847_v0 }
 0x145   :  { %757 = vmatpush3.bf16.msra.mxu1 %v756_v34 }
 0x146   :  { %758 = vmatprep.subr.bf16.mxu1 %v847_v0 }
 0x149   :  { %760 = vmatpush3.bf16.msra.mxu1 %v759_v37 }
 0x14a   :  { %761 = vmatprep.subr.bf16.mxu1 %v847_v0  ;;  %v458_v0 = vld [vmem:[%s1064_s6] ss:$0 sm:$0xff] }
 0x14d   :  { %763 = vmatpush3.bf16.msra.mxu1 %v762_v45 }
 0x203   :  { %v257_v39 = vpop.f32.mrb[0].mxu1 }
 0x204   :  { %v258_v40 = vadd.f32 %v457_v38, %v257_v39  ;;  %v597_v41 = vpop.f32.mrb[1].mxu1 }
 0x206   :  { %v261_v42 = vmax.f32 %v258_v40, 0.0 }
 0x208   :  { %631 = vmatmul.mubr.f32.vlgmr.msra.gmra.mrb[2].mxu0 %v261_v42 }
 0x2db   :  { %v368_v46 = vpop.f32.mrb[2].mxu0 }
 0x2dc   :  { %v369_v47 = vadd.f32 %v458_v0, %v368_v46  ;;  %v632_v48 = vpop.f32.mrb[3].mxu0 }
 0x2de   :  { %v372_v49 = vmax.f32 %v369_v47, 0.0 }
 0x2e0   :  { %666 = vmatmul.mubr.f32.vlgmr.msra.gmra.mrb[2].mxu1 %v372_v49 }
 0x3b3   :  { %v445_v51 = vpop.f32.mrb[2].mxu1 }
 0x3b4   :  { %v446_v52 = vadd.f32 %v459_v50, %v445_v51  ;;  %v667_v53 = vpop.f32.mrb[3].mxu1 }
 0x3b6   :  { %449 = vst [vmem:[%s1067_s9] sm:$0xff] %v446_v52 }
 0x3b7   :  { %454 = vsyncpa [#allocation3], 1 }
 0x3b8   :  { %455 = vsyncpa [#allocation5], 1 }

</bundles_post_ra>
